<compile_context>
chip_gen: v6e
topology: v6e:2x2x1
jax: 0.10.0
libtpu: 0.0.40
codegen_flags: <defaults>
</compile_context>

<pallas_src>
import jax
import jax.numpy as jnp
from jax.experimental import pallas as pl
from jax.experimental.pallas import tpu as pltpu

T = 4                      # number of ACFGConv propagation layers (as in PyTorch)
MXU_DTYPE = jnp.bfloat16   # MXU operand dtype (accumulation stays f32)


def siamese_kernel(x_ref, u_ref, adj_ref, seg_ref,
                   w1c_ref, b1c_ref,
                   wa_ref, ba_ref,
                   wb_ref, bb_ref,
                   wc_ref, bc_ref,
                   w2_ref, b2_ref,
                   g_ref):
    """Whole siamese forward (both graphs) in a single kernel invocation.

    Refs:
      x_ref   [G*N, Cin]    stacked node features                 (bf16)
      u_ref   [G*N, Cout]   stacked initial node embeddings       (bf16)
      adj_ref [G*N, G*N]    block-diag adjacency, adj[dst,src]=mult (bf16)
      seg_ref [G, G*N]      graph-membership / node-validity mask (f32)
      w1c_ref [Cin, T*Cout] all T per-layer w1 concatenated on lanes (bf16)
      b1c_ref [1, T*Cout]   matching biases                       (f32)
      wa/wb/wc [T, Cout, Cout], ba/bb/bc [T, 1, Cout]  "sigmod" MLP (bf16 / f32)
      w2_ref  [Cout, Cout], b2_ref [1, Cout]           final Linear (bf16 / f32)
      g_ref   [G, Cout]     graph embeddings output               (f32)
    """
    cout = w2_ref.shape[0]

    x = x_ref[...]                          # [GN, Cin]  bf16
    adj = adj_ref[...]                      # [GN, GN]   bf16
    u = u_ref[...].astype(jnp.float32)      # [GN, Cout] f32 loop carry

    # Hoisted out of the T loop (x never changes): all per-layer x projections
    # as one lane-dense [GN, T*Cout] matmul (T*Cout = 128 lanes at Cout=32).
    x_lin_all = (jnp.dot(x, w1c_ref[...],
                         preferred_element_type=jnp.float32)
                 + b1c_ref[...])                                    # [GN, T*Cout] f32

    for t in range(T):
        # message + aggr='add' for both graphs at once (block-diag adjacency):
        # agg[i] = sum_{(src, dst=i) in E} u[src]
        agg = jnp.dot(adj, u.astype(MXU_DTYPE),
                      preferred_element_type=jnp.float32)           # [GN, Cout] f32
        # "sigmod" MLP: Linear->ReLU->Linear->ReLU->Linear->Tanh (elementwise f32)
        h = jnp.maximum(
            jnp.dot(agg.astype(MXU_DTYPE), wa_ref[t],
                    preferred_element_type=jnp.float32) + ba_ref[t], 0.0)
        h = jnp.maximum(
            jnp.dot(h.astype(MXU_DTYPE), wb_ref[t],
                    preferred_element_type=jnp.float32) + bb_ref[t], 0.0)
        h = jnp.tanh(
            jnp.dot(h.astype(MXU_DTYPE), wc_ref[t],
                    preferred_element_type=jnp.float32) + bc_ref[t])
        # update(): relu( w1(x) + MLP(agg) )
        u = jnp.maximum(x_lin_all[:, t * cout:(t + 1) * cout] + h, 0.0)

    # Readout: e = ones([1, N]); g = e @ u per graph == masked column sums
    # (the seg mask also acts as the node-validity mask if padding is added),
    # then the final w2 Linear.  One contiguous [G, Cout] store.
    g = jnp.dot(seg_ref[...], u, preferred_element_type=jnp.float32)   # [G, Cout]
    g_ref[...] = (jnp.dot(g.astype(MXU_DTYPE), w2_ref[...],
                          preferred_element_type=jnp.float32) + b2_ref[...])


def prepare_params(params):
    """One-time weight preprocessing, hoisted OUT of the per-call path.

    Pre-concatenates the T per-layer w1 projections into a lane-dense
    [Cin, T*Cout] matrix and pre-casts every weight to its kernel dtype so the
    jitted forward ships zero wrapper-side transpose/reshape/convert ops.
    """
    t, cin, cout = params["w1"].shape
    w1c = jnp.transpose(params["w1"], (1, 0, 2)).reshape(cin, t * cout)
    b1c = jnp.transpose(params["b1"], (1, 0, 2)).reshape(1, t * cout)
    return {
        "w1c": w1c.astype(MXU_DTYPE),
        "b1c": b1c.astype(jnp.float32),
        "wa": params["wa"].astype(MXU_DTYPE),
        "ba": params["ba"].astype(jnp.float32),
        "wb": params["wb"].astype(MXU_DTYPE),
        "bb": params["bb"].astype(jnp.float32),
        "wc": params["wc"].astype(MXU_DTYPE),
        "bc": params["bc"].astype(jnp.float32),
        "w2": params["w2"].astype(MXU_DTYPE),
        "b2": params["b2"].astype(jnp.float32),
    }


def siamese_forward(dev_params, x1, u1, edge_index1, x2, u2, edge_index2):
    """Both siamese branches fused into ONE single-step pallas_call."""
    # TODO(synk): graphs of different node counts would need padding to a
    # common N; padded nodes must then be zeroed in the seg mask (readout).
    assert x1.shape == x2.shape and u1.shape == u2.shape
    n, cin = x1.shape
    cout = u1.shape[-1]
    g_count = 2
    gn = g_count * n

    # Stack the two graphs' nodes; cast data operands to the MXU dtype.
    x = jnp.concatenate([x1, x2], axis=0).astype(MXU_DTYPE)        # [2N, Cin]
    u = jnp.concatenate([u1, u2], axis=0).astype(MXU_DTYPE)        # [2N, Cout]

    # Block-diagonal adjacency built directly in bf16 with ONE scatter-add for
    # both graphs.  PyG convention: edge_index[0]=source, edge_index[1]=target;
    # adj[dst, src] = edge multiplicity (exact in bf16 up to 256 per pair).
    src = jnp.concatenate([edge_index1[0], edge_index2[0] + n])
    dst = jnp.concatenate([edge_index1[1], edge_index2[1] + n])
    adj = jnp.zeros((gn, gn), MXU_DTYPE).at[dst, src].add(
        jnp.ones_like(src, dtype=MXU_DTYPE))                       # [2N, 2N]

    # Graph-membership mask for the per-graph readout (constant-folded by jit).
    seg = jnp.repeat(jnp.eye(g_count, dtype=jnp.float32), n, axis=1)  # [2, 2N]

    inputs = (x, u, adj, seg,
              dev_params["w1c"], dev_params["b1c"],
              dev_params["wa"], dev_params["ba"],
              dev_params["wb"], dev_params["bb"],
              dev_params["wc"], dev_params["bc"],
              dev_params["w2"], dev_params["b2"])

    vmem_spec = pl.BlockSpec(memory_space=pltpu.MemorySpace.VMEM)

    # Advisory cost estimate so XLA can schedule around the custom call.
    flops = (2 * gn * cin * (T * cout)                              # hoisted x @ w1c
             + T * (2 * gn * gn * cout + 3 * 2 * gn * cout * cout)  # adj@u + 3 MLP mms
             + 2 * g_count * gn * cout                              # seg readout
             + 2 * g_count * cout * cout)                           # final w2
    in_bytes = sum(int(a.size) * a.dtype.itemsize for a in inputs)
    out_bytes = g_count * cout * 4
    cost = pl.CostEstimate(flops=flops,
                           transcendentals=T * gn * cout,           # tanh per layer
                           bytes_accessed=in_bytes + out_bytes)

    # Single invocation -> no pipeline double-buffering: budget is simply the
    # resident inputs + output + compute-scratch headroom (clamped v7x-safe).
    vmem_bytes = int(min(max(in_bytes + out_bytes + (4 << 20), 4 << 20), 48 << 20))

    g = pl.pallas_call(
        siamese_kernel,
        out_shape=jax.ShapeDtypeStruct((g_count, cout), jnp.float32),
        in_specs=[vmem_spec] * len(inputs),
        out_specs=vmem_spec,
        compiler_params=pltpu.CompilerParams(vmem_limit_bytes=vmem_bytes),
        cost_estimate=cost,
    )(*inputs)
    return g[0:1], g[1:2]                                           # each [1, Cout]


def init_params(key, in_channels, out_channels):
    # Deterministic synthetic parameters.  PyTorch Linear stores W as [out, in]
    # and computes y = x @ W.T + b; we store the pre-transposed [in, out] form.
    ks = jax.random.split(key, 10)
    s = 0.1
    return {
        "w1": s * jax.random.normal(ks[0], (T, in_channels, out_channels), jnp.float32),
        "b1": s * jax.random.normal(ks[1], (T, 1, out_channels), jnp.float32),
        "wa": s * jax.random.normal(ks[2], (T, out_channels, out_channels), jnp.float32),
        "ba": s * jax.random.normal(ks[3], (T, 1, out_channels), jnp.float32),
        "wb": s * jax.random.normal(ks[4], (T, out_channels, out_channels), jnp.float32),
        "bb": s * jax.random.normal(ks[5], (T, 1, out_channels), jnp.float32),
        "wc": s * jax.random.normal(ks[6], (T, out_channels, out_channels), jnp.float32),
        "bc": s * jax.random.normal(ks[7], (T, 1, out_channels), jnp.float32),
        "w2": s * jax.random.normal(ks[8], (out_channels, out_channels), jnp.float32),
        "b2": s * jax.random.normal(ks[9], (1, out_channels), jnp.float32),
    }


if __name__ == "__main__":
    key = jax.random.PRNGKey(0)
    N, E = 8, 16              # nodes / edges per graph
    CIN, COUT = 8, 32         # in_channels / out_channels

    k_param, k_data = jax.random.split(key)
    params = init_params(k_param, CIN, COUT)
    dev_params = prepare_params(params)   # cached device weights (one-time cost)

    kd = jax.random.split(k_data, 6)
    x1 = jax.random.normal(kd[0], (N, CIN), jnp.float32)
    u1 = jax.random.normal(kd[1], (N, COUT), jnp.float32)
    edge_index1 = jax.random.randint(kd[2], (2, E), 0, N, dtype=jnp.int32)
    x2 = jax.random.normal(kd[3], (N, CIN), jnp.float32)
    u2 = jax.random.normal(kd[4], (N, COUT), jnp.float32)
    edge_index2 = jax.random.randint(kd[5], (2, E), 0, N, dtype=jnp.int32)

    fwd = jax.jit(siamese_forward)
    g1, g2 = fwd(dev_params, x1, u1, edge_index1, x2, u2, edge_index2)
    jax.block_until_ready((g1, g2))
    assert g1.shape == (1, COUT) and g2.shape == (1, COUT)
    assert bool(jnp.all(jnp.isfinite(g1))) and bool(jnp.all(jnp.isfinite(g2)))
    print("KERNEL_OK")
</pallas_src>

<mosaic_0001>
module attributes {stable_mosaic.version = 11 : i64} {
  func.func @siamese_kernel(%arg0: memref<16x8xbf16, #tpu.memory_space<vmem>>, %arg1: memref<16x32xbf16, #tpu.memory_space<vmem>>, %arg2: memref<16x16xbf16, #tpu.memory_space<vmem>>, %arg3: memref<2x16xf32, #tpu.memory_space<vmem>>, %arg4: memref<8x128xbf16, #tpu.memory_space<vmem>>, %arg5: memref<1x128xf32, #tpu.memory_space<vmem>>, %arg6: memref<4x32x32xbf16, #tpu.memory_space<vmem>>, %arg7: memref<4x1x32xf32, #tpu.memory_space<vmem>>, %arg8: memref<4x32x32xbf16, #tpu.memory_space<vmem>>, %arg9: memref<4x1x32xf32, #tpu.memory_space<vmem>>, %arg10: memref<4x32x32xbf16, #tpu.memory_space<vmem>>, %arg11: memref<4x1x32xf32, #tpu.memory_space<vmem>>, %arg12: memref<32x32xbf16, #tpu.memory_space<vmem>>, %arg13: memref<1x32xf32, #tpu.memory_space<vmem>>, %arg14: memref<2x32xf32, #tpu.memory_space<vmem>>) attributes {dimension_semantics = [], scalar_prefetch = 0 : i64, scratch_operands = 0 : i64, tpu.core_type = #tpu.core_type<tc>} {
    %c0 = arith.constant 0 : index
    %c0_0 = arith.constant 0 : index
    %0 = vector.load %arg0[%c0, %c0_0] : memref<16x8xbf16, #tpu.memory_space<vmem>>, vector<16x8xbf16>
    %c0_1 = arith.constant 0 : index
    %c0_2 = arith.constant 0 : index
    %1 = vector.load %arg2[%c0_1, %c0_2] : memref<16x16xbf16, #tpu.memory_space<vmem>>, vector<16x16xbf16>
    %c0_3 = arith.constant 0 : index
    %c0_4 = arith.constant 0 : index
    %2 = vector.load %arg1[%c0_3, %c0_4] : memref<16x32xbf16, #tpu.memory_space<vmem>>, vector<16x32xbf16>
    %3 = arith.extf %2 : vector<16x32xbf16> to vector<16x32xf32>
    %c0_5 = arith.constant 0 : index
    %c0_6 = arith.constant 0 : index
    %4 = vector.load %arg4[%c0_5, %c0_6] : memref<8x128xbf16, #tpu.memory_space<vmem>>, vector<8x128xbf16>
    %cst = arith.constant dense<0.000000e+00> : vector<16x128xf32>
    %5 = tpu.matmul %0, %4, %cst {dimension_numbers = #tpu.dot_dimension_numbers<[1], [0], [0], [1], [0, 0, 1, 1], [], []>} : vector<16x8xbf16>, vector<8x128xbf16>, vector<16x128xf32> -> vector<16x128xf32>
    %c0_7 = arith.constant 0 : index
    %c0_8 = arith.constant 0 : index
    %6 = vector.load %arg5[%c0_7, %c0_8] : memref<1x128xf32, #tpu.memory_space<vmem>>, vector<1x128xf32>
    %7 = vector.broadcast %6 : vector<1x128xf32> to vector<16x128xf32>
    %8 = arith.addf %5, %7 : vector<16x128xf32>
    %9 = arith.truncf %3 : vector<16x32xf32> to vector<16x32xbf16>
    %cst_9 = arith.constant dense<0.000000e+00> : vector<16x32xf32>
    %10 = tpu.matmul %1, %9, %cst_9 {dimension_numbers = #tpu.dot_dimension_numbers<[1], [0], [0], [1], [0, 0, 1, 1], [], []>} : vector<16x16xbf16>, vector<16x32xbf16>, vector<16x32xf32> -> vector<16x32xf32>
    %11 = arith.truncf %10 : vector<16x32xf32> to vector<16x32xbf16>
    %c0_10 = arith.constant 0 : index
    %c0_11 = arith.constant 0 : index
    %c0_12 = arith.constant 0 : index
    %12 = vector.load %arg6[%c0_10, %c0_11, %c0_12] : memref<4x32x32xbf16, #tpu.memory_space<vmem>>, vector<1x32x32xbf16>
    %13 = vector.shape_cast %12 : vector<1x32x32xbf16> to vector<32x32xbf16>
    %cst_13 = arith.constant dense<0.000000e+00> : vector<16x32xf32>
    %14 = tpu.matmul %11, %13, %cst_13 {dimension_numbers = #tpu.dot_dimension_numbers<[1], [0], [0], [1], [0, 0, 1, 1], [], []>} : vector<16x32xbf16>, vector<32x32xbf16>, vector<16x32xf32> -> vector<16x32xf32>
    %c0_14 = arith.constant 0 : index
    %c0_15 = arith.constant 0 : index
    %c0_16 = arith.constant 0 : index
    %15 = vector.load %arg7[%c0_14, %c0_15, %c0_16] : memref<4x1x32xf32, #tpu.memory_space<vmem>>, vector<1x1x32xf32>
    %16 = vector.shape_cast %15 : vector<1x1x32xf32> to vector<1x32xf32>
    %17 = vector.broadcast %16 : vector<1x32xf32> to vector<16x32xf32>
    %18 = arith.addf %14, %17 : vector<16x32xf32>
    %cst_17 = arith.constant 0.000000e+00 : f32
    %19 = vector.broadcast %cst_17 : f32 to vector<16x32xf32>
    %20 = arith.maximumf %18, %19 : vector<16x32xf32>
    %21 = arith.truncf %20 : vector<16x32xf32> to vector<16x32xbf16>
    %c0_18 = arith.constant 0 : index
    %c0_19 = arith.constant 0 : index
    %c0_20 = arith.constant 0 : index
    %22 = vector.load %arg8[%c0_18, %c0_19, %c0_20] : memref<4x32x32xbf16, #tpu.memory_space<vmem>>, vector<1x32x32xbf16>
    %23 = vector.shape_cast %22 : vector<1x32x32xbf16> to vector<32x32xbf16>
    %cst_21 = arith.constant dense<0.000000e+00> : vector<16x32xf32>
    %24 = tpu.matmul %21, %23, %cst_21 {dimension_numbers = #tpu.dot_dimension_numbers<[1], [0], [0], [1], [0, 0, 1, 1], [], []>} : vector<16x32xbf16>, vector<32x32xbf16>, vector<16x32xf32> -> vector<16x32xf32>
    %c0_22 = arith.constant 0 : index
    %c0_23 = arith.constant 0 : index
    %c0_24 = arith.constant 0 : index
    %25 = vector.load %arg9[%c0_22, %c0_23, %c0_24] : memref<4x1x32xf32, #tpu.memory_space<vmem>>, vector<1x1x32xf32>
    %26 = vector.shape_cast %25 : vector<1x1x32xf32> to vector<1x32xf32>
    %27 = vector.broadcast %26 : vector<1x32xf32> to vector<16x32xf32>
    %28 = arith.addf %24, %27 : vector<16x32xf32>
    %cst_25 = arith.constant 0.000000e+00 : f32
    %29 = vector.broadcast %cst_25 : f32 to vector<16x32xf32>
    %30 = arith.maximumf %28, %29 : vector<16x32xf32>
    %31 = arith.truncf %30 : vector<16x32xf32> to vector<16x32xbf16>
    %c0_26 = arith.constant 0 : index
    %c0_27 = arith.constant 0 : index
    %c0_28 = arith.constant 0 : index
    %32 = vector.load %arg10[%c0_26, %c0_27, %c0_28] : memref<4x32x32xbf16, #tpu.memory_space<vmem>>, vector<1x32x32xbf16>
    %33 = vector.shape_cast %32 : vector<1x32x32xbf16> to vector<32x32xbf16>
    %cst_29 = arith.constant dense<0.000000e+00> : vector<16x32xf32>
    %34 = tpu.matmul %31, %33, %cst_29 {dimension_numbers = #tpu.dot_dimension_numbers<[1], [0], [0], [1], [0, 0, 1, 1], [], []>} : vector<16x32xbf16>, vector<32x32xbf16>, vector<16x32xf32> -> vector<16x32xf32>
    %c0_30 = arith.constant 0 : index
    %c0_31 = arith.constant 0 : index
    %c0_32 = arith.constant 0 : index
    %35 = vector.load %arg11[%c0_30, %c0_31, %c0_32] : memref<4x1x32xf32, #tpu.memory_space<vmem>>, vector<1x1x32xf32>
    %36 = vector.shape_cast %35 : vector<1x1x32xf32> to vector<1x32xf32>
    %37 = vector.broadcast %36 : vector<1x32xf32> to vector<16x32xf32>
    %38 = arith.addf %34, %37 : vector<16x32xf32>
    %39 = math.tanh %38 : vector<16x32xf32>
    %40 = vector.extract_strided_slice %8 {offsets = [0, 0], sizes = [16, 32], strides = [1, 1]} : vector<16x128xf32> to vector<16x32xf32>
    %41 = arith.addf %40, %39 : vector<16x32xf32>
    %cst_33 = arith.constant 0.000000e+00 : f32
    %42 = vector.broadcast %cst_33 : f32 to vector<16x32xf32>
    %43 = arith.maximumf %41, %42 : vector<16x32xf32>
    %44 = arith.truncf %43 : vector<16x32xf32> to vector<16x32xbf16>
    %cst_34 = arith.constant dense<0.000000e+00> : vector<16x32xf32>
    %45 = tpu.matmul %1, %44, %cst_34 {dimension_numbers = #tpu.dot_dimension_numbers<[1], [0], [0], [1], [0, 0, 1, 1], [], []>} : vector<16x16xbf16>, vector<16x32xbf16>, vector<16x32xf32> -> vector<16x32xf32>
    %46 = arith.truncf %45 : vector<16x32xf32> to vector<16x32xbf16>
    %c1 = arith.constant 1 : index
    %c0_35 = arith.constant 0 : index
    %c0_36 = arith.constant 0 : index
    %47 = vector.load %arg6[%c1, %c0_35, %c0_36] : memref<4x32x32xbf16, #tpu.memory_space<vmem>>, vector<1x32x32xbf16>
    %48 = vector.shape_cast %47 : vector<1x32x32xbf16> to vector<32x32xbf16>
    %cst_37 = arith.constant dense<0.000000e+00> : vector<16x32xf32>
    %49 = tpu.matmul %46, %48, %cst_37 {dimension_numbers = #tpu.dot_dimension_numbers<[1], [0], [0], [1], [0, 0, 1, 1], [], []>} : vector<16x32xbf16>, vector<32x32xbf16>, vector<16x32xf32> -> vector<16x32xf32>
    %c1_38 = arith.constant 1 : index
    %c0_39 = arith.constant 0 : index
    %c0_40 = arith.constant 0 : index
    %50 = vector.load %arg7[%c1_38, %c0_39, %c0_40] : memref<4x1x32xf32, #tpu.memory_space<vmem>>, vector<1x1x32xf32>
    %51 = vector.shape_cast %50 : vector<1x1x32xf32> to vector<1x32xf32>
    %52 = vector.broadcast %51 : vector<1x32xf32> to vector<16x32xf32>
    %53 = arith.addf %49, %52 : vector<16x32xf32>
    %cst_41 = arith.constant 0.000000e+00 : f32
    %54 = vector.broadcast %cst_41 : f32 to vector<16x32xf32>
    %55 = arith.maximumf %53, %54 : vector<16x32xf32>
    %56 = arith.truncf %55 : vector<16x32xf32> to vector<16x32xbf16>
    %c1_42 = arith.constant 1 : index
    %c0_43 = arith.constant 0 : index
    %c0_44 = arith.constant 0 : index
    %57 = vector.load %arg8[%c1_42, %c0_43, %c0_44] : memref<4x32x32xbf16, #tpu.memory_space<vmem>>, vector<1x32x32xbf16>
    %58 = vector.shape_cast %57 : vector<1x32x32xbf16> to vector<32x32xbf16>
    %cst_45 = arith.constant dense<0.000000e+00> : vector<16x32xf32>
    %59 = tpu.matmul %56, %58, %cst_45 {dimension_numbers = #tpu.dot_dimension_numbers<[1], [0], [0], [1], [0, 0, 1, 1], [], []>} : vector<16x32xbf16>, vector<32x32xbf16>, vector<16x32xf32> -> vector<16x32xf32>
    %c1_46 = arith.constant 1 : index
    %c0_47 = arith.constant 0 : index
    %c0_48 = arith.constant 0 : index
    %60 = vector.load %arg9[%c1_46, %c0_47, %c0_48] : memref<4x1x32xf32, #tpu.memory_space<vmem>>, vector<1x1x32xf32>
    %61 = vector.shape_cast %60 : vector<1x1x32xf32> to vector<1x32xf32>
    %62 = vector.broadcast %61 : vector<1x32xf32> to vector<16x32xf32>
    %63 = arith.addf %59, %62 : vector<16x32xf32>
    %cst_49 = arith.constant 0.000000e+00 : f32
    %64 = vector.broadcast %cst_49 : f32 to vector<16x32xf32>
    %65 = arith.maximumf %63, %64 : vector<16x32xf32>
    %66 = arith.truncf %65 : vector<16x32xf32> to vector<16x32xbf16>
    %c1_50 = arith.constant 1 : index
    %c0_51 = arith.constant 0 : index
    %c0_52 = arith.constant 0 : index
    %67 = vector.load %arg10[%c1_50, %c0_51, %c0_52] : memref<4x32x32xbf16, #tpu.memory_space<vmem>>, vector<1x32x32xbf16>
    %68 = vector.shape_cast %67 : vector<1x32x32xbf16> to vector<32x32xbf16>
    %cst_53 = arith.constant dense<0.000000e+00> : vector<16x32xf32>
    %69 = tpu.matmul %66, %68, %cst_53 {dimension_numbers = #tpu.dot_dimension_numbers<[1], [0], [0], [1], [0, 0, 1, 1], [], []>} : vector<16x32xbf16>, vector<32x32xbf16>, vector<16x32xf32> -> vector<16x32xf32>
    %c1_54 = arith.constant 1 : index
    %c0_55 = arith.constant 0 : index
    %c0_56 = arith.constant 0 : index
    %70 = vector.load %arg11[%c1_54, %c0_55, %c0_56] : memref<4x1x32xf32, #tpu.memory_space<vmem>>, vector<1x1x32xf32>
    %71 = vector.shape_cast %70 : vector<1x1x32xf32> to vector<1x32xf32>
    %72 = vector.broadcast %71 : vector<1x32xf32> to vector<16x32xf32>
    %73 = arith.addf %69, %72 : vector<16x32xf32>
    %74 = math.tanh %73 : vector<16x32xf32>
    %75 = vector.extract_strided_slice %8 {offsets = [0, 32], sizes = [16, 32], strides = [1, 1]} : vector<16x128xf32> to vector<16x32xf32>
    %76 = arith.addf %75, %74 : vector<16x32xf32>
    %cst_57 = arith.constant 0.000000e+00 : f32
    %77 = vector.broadcast %cst_57 : f32 to vector<16x32xf32>
    %78 = arith.maximumf %76, %77 : vector<16x32xf32>
    %79 = arith.truncf %78 : vector<16x32xf32> to vector<16x32xbf16>
    %cst_58 = arith.constant dense<0.000000e+00> : vector<16x32xf32>
    %80 = tpu.matmul %1, %79, %cst_58 {dimension_numbers = #tpu.dot_dimension_numbers<[1], [0], [0], [1], [0, 0, 1, 1], [], []>} : vector<16x16xbf16>, vector<16x32xbf16>, vector<16x32xf32> -> vector<16x32xf32>
    %81 = arith.truncf %80 : vector<16x32xf32> to vector<16x32xbf16>
    %c2 = arith.constant 2 : index
    %c0_59 = arith.constant 0 : index
    %c0_60 = arith.constant 0 : index
    %82 = vector.load %arg6[%c2, %c0_59, %c0_60] : memref<4x32x32xbf16, #tpu.memory_space<vmem>>, vector<1x32x32xbf16>
    %83 = vector.shape_cast %82 : vector<1x32x32xbf16> to vector<32x32xbf16>
    %cst_61 = arith.constant dense<0.000000e+00> : vector<16x32xf32>
    %84 = tpu.matmul %81, %83, %cst_61 {dimension_numbers = #tpu.dot_dimension_numbers<[1], [0], [0], [1], [0, 0, 1, 1], [], []>} : vector<16x32xbf16>, vector<32x32xbf16>, vector<16x32xf32> -> vector<16x32xf32>
    %c2_62 = arith.constant 2 : index
    %c0_63 = arith.constant 0 : index
    %c0_64 = arith.constant 0 : index
    %85 = vector.load %arg7[%c2_62, %c0_63, %c0_64] : memref<4x1x32xf32, #tpu.memory_space<vmem>>, vector<1x1x32xf32>
    %86 = vector.shape_cast %85 : vector<1x1x32xf32> to vector<1x32xf32>
    %87 = vector.broadcast %86 : vector<1x32xf32> to vector<16x32xf32>
    %88 = arith.addf %84, %87 : vector<16x32xf32>
    %cst_65 = arith.constant 0.000000e+00 : f32
    %89 = vector.broadcast %cst_65 : f32 to vector<16x32xf32>
    %90 = arith.maximumf %88, %89 : vector<16x32xf32>
    %91 = arith.truncf %90 : vector<16x32xf32> to vector<16x32xbf16>
    %c2_66 = arith.constant 2 : index
    %c0_67 = arith.constant 0 : index
    %c0_68 = arith.constant 0 : index
    %92 = vector.load %arg8[%c2_66, %c0_67, %c0_68] : memref<4x32x32xbf16, #tpu.memory_space<vmem>>, vector<1x32x32xbf16>
    %93 = vector.shape_cast %92 : vector<1x32x32xbf16> to vector<32x32xbf16>
    %cst_69 = arith.constant dense<0.000000e+00> : vector<16x32xf32>
    %94 = tpu.matmul %91, %93, %cst_69 {dimension_numbers = #tpu.dot_dimension_numbers<[1], [0], [0], [1], [0, 0, 1, 1], [], []>} : vector<16x32xbf16>, vector<32x32xbf16>, vector<16x32xf32> -> vector<16x32xf32>
    %c2_70 = arith.constant 2 : index
    %c0_71 = arith.constant 0 : index
    %c0_72 = arith.constant 0 : index
    %95 = vector.load %arg9[%c2_70, %c0_71, %c0_72] : memref<4x1x32xf32, #tpu.memory_space<vmem>>, vector<1x1x32xf32>
    %96 = vector.shape_cast %95 : vector<1x1x32xf32> to vector<1x32xf32>
    %97 = vector.broadcast %96 : vector<1x32xf32> to vector<16x32xf32>
    %98 = arith.addf %94, %97 : vector<16x32xf32>
    %cst_73 = arith.constant 0.000000e+00 : f32
    %99 = vector.broadcast %cst_73 : f32 to vector<16x32xf32>
    %100 = arith.maximumf %98, %99 : vector<16x32xf32>
    %101 = arith.truncf %100 : vector<16x32xf32> to vector<16x32xbf16>
    %c2_74 = arith.constant 2 : index
    %c0_75 = arith.constant 0 : index
    %c0_76 = arith.constant 0 : index
    %102 = vector.load %arg10[%c2_74, %c0_75, %c0_76] : memref<4x32x32xbf16, #tpu.memory_space<vmem>>, vector<1x32x32xbf16>
    %103 = vector.shape_cast %102 : vector<1x32x32xbf16> to vector<32x32xbf16>
    %cst_77 = arith.constant dense<0.000000e+00> : vector<16x32xf32>
    %104 = tpu.matmul %101, %103, %cst_77 {dimension_numbers = #tpu.dot_dimension_numbers<[1], [0], [0], [1], [0, 0, 1, 1], [], []>} : vector<16x32xbf16>, vector<32x32xbf16>, vector<16x32xf32> -> vector<16x32xf32>
    %c2_78 = arith.constant 2 : index
    %c0_79 = arith.constant 0 : index
    %c0_80 = arith.constant 0 : index
    %105 = vector.load %arg11[%c2_78, %c0_79, %c0_80] : memref<4x1x32xf32, #tpu.memory_space<vmem>>, vector<1x1x32xf32>
    %106 = vector.shape_cast %105 : vector<1x1x32xf32> to vector<1x32xf32>
    %107 = vector.broadcast %106 : vector<1x32xf32> to vector<16x32xf32>
    %108 = arith.addf %104, %107 : vector<16x32xf32>
    %109 = math.tanh %108 : vector<16x32xf32>
    %110 = vector.extract_strided_slice %8 {offsets = [0, 64], sizes = [16, 32], strides = [1, 1]} : vector<16x128xf32> to vector<16x32xf32>
    %111 = arith.addf %110, %109 : vector<16x32xf32>
    %cst_81 = arith.constant 0.000000e+00 : f32
    %112 = vector.broadcast %cst_81 : f32 to vector<16x32xf32>
    %113 = arith.maximumf %111, %112 : vector<16x32xf32>
    %114 = arith.truncf %113 : vector<16x32xf32> to vector<16x32xbf16>
    %cst_82 = arith.constant dense<0.000000e+00> : vector<16x32xf32>
    %115 = tpu.matmul %1, %114, %cst_82 {dimension_numbers = #tpu.dot_dimension_numbers<[1], [0], [0], [1], [0, 0, 1, 1], [], []>} : vector<16x16xbf16>, vector<16x32xbf16>, vector<16x32xf32> -> vector<16x32xf32>
    %116 = arith.truncf %115 : vector<16x32xf32> to vector<16x32xbf16>
    %c3 = arith.constant 3 : index
    %c0_83 = arith.constant 0 : index
    %c0_84 = arith.constant 0 : index
    %117 = vector.load %arg6[%c3, %c0_83, %c0_84] : memref<4x32x32xbf16, #tpu.memory_space<vmem>>, vector<1x32x32xbf16>
    %118 = vector.shape_cast %117 : vector<1x32x32xbf16> to vector<32x32xbf16>
    %cst_85 = arith.constant dense<0.000000e+00> : vector<16x32xf32>
    %119 = tpu.matmul %116, %118, %cst_85 {dimension_numbers = #tpu.dot_dimension_numbers<[1], [0], [0], [1], [0, 0, 1, 1], [], []>} : vector<16x32xbf16>, vector<32x32xbf16>, vector<16x32xf32> -> vector<16x32xf32>
    %c3_86 = arith.constant 3 : index
    %c0_87 = arith.constant 0 : index
    %c0_88 = arith.constant 0 : index
    %120 = vector.load %arg7[%c3_86, %c0_87, %c0_88] : memref<4x1x32xf32, #tpu.memory_space<vmem>>, vector<1x1x32xf32>
    %121 = vector.shape_cast %120 : vector<1x1x32xf32> to vector<1x32xf32>
    %122 = vector.broadcast %121 : vector<1x32xf32> to vector<16x32xf32>
    %123 = arith.addf %119, %122 : vector<16x32xf32>
    %cst_89 = arith.constant 0.000000e+00 : f32
    %124 = vector.broadcast %cst_89 : f32 to vector<16x32xf32>
    %125 = arith.maximumf %123, %124 : vector<16x32xf32>
    %126 = arith.truncf %125 : vector<16x32xf32> to vector<16x32xbf16>
    %c3_90 = arith.constant 3 : index
    %c0_91 = arith.constant 0 : index
    %c0_92 = arith.constant 0 : index
    %127 = vector.load %arg8[%c3_90, %c0_91, %c0_92] : memref<4x32x32xbf16, #tpu.memory_space<vmem>>, vector<1x32x32xbf16>
    %128 = vector.shape_cast %127 : vector<1x32x32xbf16> to vector<32x32xbf16>
    %cst_93 = arith.constant dense<0.000000e+00> : vector<16x32xf32>
    %129 = tpu.matmul %126, %128, %cst_93 {dimension_numbers = #tpu.dot_dimension_numbers<[1], [0], [0], [1], [0, 0, 1, 1], [], []>} : vector<16x32xbf16>, vector<32x32xbf16>, vector<16x32xf32> -> vector<16x32xf32>
    %c3_94 = arith.constant 3 : index
    %c0_95 = arith.constant 0 : index
    %c0_96 = arith.constant 0 : index
    %130 = vector.load %arg9[%c3_94, %c0_95, %c0_96] : memref<4x1x32xf32, #tpu.memory_space<vmem>>, vector<1x1x32xf32>
    %131 = vector.shape_cast %130 : vector<1x1x32xf32> to vector<1x32xf32>
    %132 = vector.broadcast %131 : vector<1x32xf32> to vector<16x32xf32>
    %133 = arith.addf %129, %132 : vector<16x32xf32>
    %cst_97 = arith.constant 0.000000e+00 : f32
    %134 = vector.broadcast %cst_97 : f32 to vector<16x32xf32>
    %135 = arith.maximumf %133, %134 : vector<16x32xf32>
    %136 = arith.truncf %135 : vector<16x32xf32> to vector<16x32xbf16>
    %c3_98 = arith.constant 3 : index
    %c0_99 = arith.constant 0 : index
    %c0_100 = arith.constant 0 : index
    %137 = vector.load %arg10[%c3_98, %c0_99, %c0_100] : memref<4x32x32xbf16, #tpu.memory_space<vmem>>, vector<1x32x32xbf16>
    %138 = vector.shape_cast %137 : vector<1x32x32xbf16> to vector<32x32xbf16>
    %cst_101 = arith.constant dense<0.000000e+00> : vector<16x32xf32>
    %139 = tpu.matmul %136, %138, %cst_101 {dimension_numbers = #tpu.dot_dimension_numbers<[1], [0], [0], [1], [0, 0, 1, 1], [], []>} : vector<16x32xbf16>, vector<32x32xbf16>, vector<16x32xf32> -> vector<16x32xf32>
    %c3_102 = arith.constant 3 : index
    %c0_103 = arith.constant 0 : index
    %c0_104 = arith.constant 0 : index
    %140 = vector.load %arg11[%c3_102, %c0_103, %c0_104] : memref<4x1x32xf32, #tpu.memory_space<vmem>>, vector<1x1x32xf32>
    %141 = vector.shape_cast %140 : vector<1x1x32xf32> to vector<1x32xf32>
    %142 = vector.broadcast %141 : vector<1x32xf32> to vector<16x32xf32>
    %143 = arith.addf %139, %142 : vector<16x32xf32>
    %144 = math.tanh %143 : vector<16x32xf32>
    %145 = vector.extract_strided_slice %8 {offsets = [0, 96], sizes = [16, 32], strides = [1, 1]} : vector<16x128xf32> to vector<16x32xf32>
    %146 = arith.addf %145, %144 : vector<16x32xf32>
    %cst_105 = arith.constant 0.000000e+00 : f32
    %147 = vector.broadcast %cst_105 : f32 to vector<16x32xf32>
    %148 = arith.maximumf %146, %147 : vector<16x32xf32>
    %c0_106 = arith.constant 0 : index
    %c0_107 = arith.constant 0 : index
    %149 = vector.load %arg3[%c0_106, %c0_107] : memref<2x16xf32, #tpu.memory_space<vmem>>, vector<2x16xf32>
    %cst_108 = arith.constant dense<0.000000e+00> : vector<2x32xf32>
    %150 = tpu.matmul %149, %148, %cst_108 {dimension_numbers = #tpu.dot_dimension_numbers<[1], [0], [0], [1], [0, 0, 1, 1], [], []>} : vector<2x16xf32>, vector<16x32xf32>, vector<2x32xf32> -> vector<2x32xf32>
    %151 = arith.truncf %150 : vector<2x32xf32> to vector<2x32xbf16>
    %c0_109 = arith.constant 0 : index
    %c0_110 = arith.constant 0 : index
    %152 = vector.load %arg12[%c0_109, %c0_110] : memref<32x32xbf16, #tpu.memory_space<vmem>>, vector<32x32xbf16>
    %cst_111 = arith.constant dense<0.000000e+00> : vector<2x32xf32>
    %153 = tpu.matmul %151, %152, %cst_111 {dimension_numbers = #tpu.dot_dimension_numbers<[1], [0], [0], [1], [0, 0, 1, 1], [], []>} : vector<2x32xbf16>, vector<32x32xbf16>, vector<2x32xf32> -> vector<2x32xf32>
    %c0_112 = arith.constant 0 : index
    %c0_113 = arith.constant 0 : index
    %154 = vector.load %arg13[%c0_112, %c0_113] : memref<1x32xf32, #tpu.memory_space<vmem>>, vector<1x32xf32>
    %155 = vector.broadcast %154 : vector<1x32xf32> to vector<2x32xf32>
    %156 = arith.addf %153, %155 : vector<2x32xf32>
    %c0_114 = arith.constant 0 : index
    %c0_115 = arith.constant 0 : index
    %157 = vector.load %arg14[%c0_114, %c0_115] : memref<2x32xf32, #tpu.memory_space<vmem>>, vector<2x32xf32>
    tpu.vector_store %arg14[%c0_114, %c0_115], %156 {strides = array<i32>} : memref<2x32xf32, #tpu.memory_space<vmem>>, vector<2x32xf32>,
    return
  }
}

</mosaic_0001>

<bundles_post_ra>
// kernel: siamese_forward.1
= control target key start
LH: loop header
LB: loop body
LE: loop exit
PB: predicated region body
PF: predicated region fallthrough
CT: control target
= control target key end

     0   :  { %vm71_vm0 = vcmask 1043456   ;;  %v1710_v0 = vmov 0.0   ;;  %vm1711_vm1 = vmmov 0   ;;  %vm67_vm2 = vcmask 64512   ;;  %s1712_s18 = smov 32   ;;  %s1714_s17 = smov 64   ;;  %s2048_s4 = inlined_call_operand.vmem [shape: bf16[8,128], index: 4, kind: input, shape index: {}]   ;;  %s2049_s0 = inlined_call_operand.vmem [shape: bf16[16,8], index: 0, kind: input, shape index: {}]   ;;  %s2050_s1 = inlined_call_operand.vmem [shape: bf16[16,32], index: 1, kind: input, shape index: {}]   ;;  %s2051_s2 = inlined_call_operand.vmem [shape: bf16[16,16], index: 2, kind: input, shape index: {}]   ;;  %s2052_s6 = inlined_call_operand.vmem [shape: bf16[4,32,32], index: 6, kind: input, shape index: {}]   ;;  %s2053_s8 = inlined_call_operand.vmem [shape: bf16[4,32,32], index: 8, kind: input, shape index: {}]   ;;  %s2054_s7 = inlined_call_operand.vmem [shape: f32[4,1,32], index: 7, kind: input, shape index: {}]   ;;  %s2055_s10 = inlined_call_operand.vmem [shape: bf16[4,32,32], index: 10, kind: input, shape index: {}]   ;;  %s2056_s9 = inlined_call_operand.vmem [shape: f32[4,1,32], index: 9, kind: input, shape index: {}]   ;;  %s2057_s11 = inlined_call_operand.vmem [shape: f32[4,1,32], index: 11, kind: input, shape index: {}]   ;;  %s2058_s5 = inlined_call_operand.vmem [shape: f32[1,128], index: 5, kind: input, shape index: {}]   ;;  %s2059_s12 = inlined_call_operand.vmem [shape: bf16[32,32], index: 12, kind: input, shape index: {}]   ;;  %s2060_s3 = inlined_call_operand.vmem [shape: f32[2,16], index: 3, kind: input, shape index: {}]   ;;  %s2061_s13 = inlined_call_operand.vmem [shape: f32[1,32], index: 13, kind: input, shape index: {}]   ;;  %s2062_s14 = inlined_call_operand.vmem [shape: f32[2,32], index: 14, kind: output, shape index: {}]  }
   0x1   :  { %1519 = vmatprep.subr.bf16.mxu1 %v1710_v0  ;;  %v54_v1 = vld [vmem:[%s2048_s4] sm:$0xf]  ;;  %1521 = vmatprep.mubr.msk.bf16.mxu1 %vm1711_vm1, %v1710_v0  ;;  %vm127_vm3 = vcmask 130048   ;;  %v1668_v6 = vld [vmem:[%s2052_s6 + $0x8] sm:$0xff]   ;;  %vm196_vm4 = vcmask 261120   ;;  %v1674_v58 = vld [vmem:[%s2052_s6 + $0x18] sm:$0xff]  }
   0x2   :  { %v73_v2 = vsel %vm71_vm0, %v54_v1, 0  ;;  %v1665_v3 = vld [vmem:[%s2049_s0] sm:$0xff]   ;;  %1531 = vmatprep.subr.bf16.mxu0 %v1710_v0  ;;  %1535 = vmatprep.mubr.msk.bf16.mxu0 %vm1711_vm1, %v1710_v0  ;;  %v1670_v17 = vld [vmem:[%s2053_s8 + $0x8] sm:$0xff]   ;;  %v1675_v59 = vld [vmem:[%s2052_s6 + $0x10] sm:$0xff]   ;;  %s1713_s0 = smov 96   ;;  %vm1354_vm5 = vcmask 254976  }
   0x3   :  { %1520 = vmatpush3.bf16.msra.mxu1 %v73_v2  ;;  %v1666_v4 = vld [vmem:[%s2050_s1] sm:$0xff]   ;;  %1532 = vmatpush3.bf16.msra.mxu0 %v1668_v6  ;;  %v1672_v29 = vld [vmem:[%s2055_s10 + $0x8] sm:$0xff]   ;;  %v1676_v2 = vld [vmem:[%s2053_s8 + $0x18] sm:$0xff]  }
   0x4   :  { %1525 = vmatprep.subr.bf16.mxu1 %v1710_v0  ;;  %v1812_v5 = vld [vmem:[%s2051_s2] sm:$0xff]   ;;  %1533 = vmatprep.subr.bf16.mxu0 %v1710_v0 }
   0x5   :  { %v1669_v7 = vld [vmem:[%s2052_s6] sm:$0xff]  }
   0x6   :  { %1522 = vmatmul.mubr.msk.bf16.vlgmr.msra.gmra.mxu1 %vm67_vm2, %v1665_v3  ;;  %v1671_v18 = vld [vmem:[%s2053_s8] sm:$0xff]   ;;  %v1677_v3 = vld [vmem:[%s2053_s8 + $0x10] sm:$0xff]  }
   0x7   :  { %1526 = vmatpush3.bf16.msra.mxu1 %v1666_v4  ;;  %1527 = vmatprep.mubr.msk.bf16.mxu1 %vm1711_vm1, %v1710_v0  ;;  %v1366_v19 = vld [vmem:[%s2054_s7] ss:$0 sm:$0xff]  ;;  %v1384_v4 = vld [vmem:[%s2054_s7 + $0x1] ss:$0 sm:$0xff] }
   0x8   :  { %1539 = vmatprep.subr.bf16.mxu1 %v1710_v0  ;;  %1534 = vmatpush3.bf16.msra.mxu0 %v1669_v7  ;;  %v1673_v30 = vld [vmem:[%s2055_s10] sm:$0xff]  }
   0x9   :  { %1547 = vmatprep.subr.bf16.mxu0 %v1710_v0  ;;  %v1370_v31 = vld [vmem:[%s2056_s9] ss:$0 sm:$0xff] }
   0xa   :  { %v1374_v41 = vld [vmem:[%s2057_s11] ss:$0 sm:$0xff] }
   0xb   :  { %v1360_v48 = vld [vmem:[%s2058_s5] ss:$0 sm:$0xff] }
   0xe   :  { %1528 = vmatmul.mubr.msk.bf16.vlgmr.msra.gmra.mxu1 %vm127_vm3, %v1812_v5 }
   0xf   :  { %1543 = vmatprep.mubr.msk.bf16.mxu1 %vm1711_vm1, %v1710_v0  ;;  %1540 = vmatpush3.bf16.msra.mxu1 %v1670_v17  ;;  %v1393_v17 = vld [vmem:[%s2056_s9 + $0x1] ss:$0 sm:$0xff] }
  0x10   :  { %1541 = vmatprep.subr.bf16.mxu1 %v1710_v0 }
  0x13   :  { %1542 = vmatpush3.bf16.msra.mxu1 %v1671_v18 }
  0x14   :  { %1555 = vmatprep.subr.bf16.mxu1 %v1710_v0 }
  0xc6   :  { %v1826_v8 = vpop.f32.mrf.mxu1 }
  0xc7   :  { %v1868_v50 = vadd.f32 %v1360_v48, %v1826_v8 }
  0xc8   :  { %v1523_v9 = vpop.f32.mrf.mxu1 }
  0xca   :  { %v1828_v10 = vpop.f32.mrf.mxu1 }
  0xcb   :  { %v1871_v51 = vadd.f32 %v1360_v48, %v1828_v10 }
  0xcc   :  { %v1524_v11 = vpop.f32.mrf.mxu1 }
  0xce   :  { %v165_v12 = vpop.f32.mrf.mxu1 }
  0xd0   :  { %v1529_v13 = vpop.f32.mrf.mxu1 }
  0xd2   :  { %v168_v14 = vpop.f32.mrf.mxu1 }
  0xd3   :  { %v172_v15 = vpack.c.bf16 %v168_v14, %v165_v12 }
  0xd4   :  { %v1530_v16 = vpop.f32.mrf.mxu1 }
  0xd5   :  { %1536 = vmatmul.mubr.msk.bf16.vlgmr.msra.gmra.mxu0 %vm196_vm4, %v172_v15  ;;  %v1678_v15 = vld [vmem:[%s2055_s10 + $0x18] sm:$0xff]   ;;  %v1679_v16 = vld [vmem:[%s2055_s10 + $0x10] sm:$0xff]  }
  0xd6   :  { %1551 = vmatprep.mubr.msk.bf16.mxu0 %vm1711_vm1, %v1710_v0  ;;  %1548 = vmatpush3.bf16.msra.mxu0 %v1672_v29 }
  0xd7   :  { %1549 = vmatprep.subr.bf16.mxu0 %v1710_v0 }
  0xda   :  { %1550 = vmatpush3.bf16.msra.mxu0 %v1673_v30 }
  0xdb   :  { %1561 = vmatprep.subr.bf16.mxu0 %v1710_v0 }
 0x195   :  { %v234_v20 = vpop.f32.mrf.mxu0 }
 0x196   :  { %v235_v22 = vadd.f32 %v1366_v19, %v234_v20 }
 0x197   :  { %v1537_v21 = vpop.f32.mrf.mxu0 }
 0x198   :  { %v241_v26 = vmax.f32 %v235_v22, 0.0 }
 0x199   :  { %v237_v23 = vpop.f32.mrf.mxu0 }
 0x19a   :  { %v238_v24 = vadd.f32 %v1366_v19, %v237_v23 }
 0x19b   :  { %v1538_v25 = vpop.f32.mrf.mxu0 }
 0x19c   :  { %v242_v27 = vmax.f32 %v238_v24, 0.0 }
 0x19e   :  { %v243_v28 = vpack.c.bf16 %v242_v27, %v241_v26  ;;  %v1402_v27 = vld [vmem:[%s2057_s11 + $0x1] ss:$0 sm:$0xff] }
 0x1a0   :  { %1544 = vmatmul.mubr.msk.bf16.vlgmr.msra.gmra.mxu1 %vm196_vm4, %v243_v28 }
 0x1a1   :  { %1557 = vmatprep.mubr.msk.bf16.mxu1 %vm1711_vm1, %v1710_v0 }
 0x260   :  { %v304_v32 = vpop.f32.mrf.mxu1 }
 0x261   :  { %v305_v34 = vadd.f32 %v1370_v31, %v304_v32 }
 0x262   :  { %v1545_v33 = vpop.f32.mrf.mxu1 }
 0x263   :  { %v311_v38 = vmax.f32 %v305_v34, 0.0 }
 0x264   :  { %v307_v35 = vpop.f32.mrf.mxu1 }
 0x265   :  { %v308_v36 = vadd.f32 %v1370_v31, %v307_v35 }
 0x266   :  { %v1546_v37 = vpop.f32.mrf.mxu1 }
 0x267   :  { %v312_v39 = vmax.f32 %v308_v36, 0.0 }
 0x269   :  { %v313_v40 = vpack.c.bf16 %v312_v39, %v311_v38 }
 0x26b   :  { %1552 = vmatmul.mubr.msk.bf16.vlgmr.msra.gmra.mxu0 %vm196_vm4, %v313_v40 }
 0x26c   :  { %1565 = vmatprep.mubr.msk.bf16.mxu0 %vm1711_vm1, %v1710_v0  ;;  %1562 = vmatpush3.bf16.msra.mxu0 %v1674_v58 }
 0x26d   :  { %1563 = vmatprep.subr.bf16.mxu0 %v1710_v0 }
 0x270   :  { %1564 = vmatpush3.bf16.msra.mxu0 %v1675_v59 }
 0x271   :  { %1577 = vmatprep.subr.bf16.mxu0 %v1710_v0 }
 0x32b   :  { %v374_v42 = vpop.f32.mrf.mxu0 }
 0x32c   :  { %v375_v43 = vadd.f32 %v1374_v41, %v374_v42 }
 0x32d   :  { %v1553_v44 = vpop.f32.mrf.mxu0 }
 0x32e   :  { %1694 = vtanh.f32 %v375_v43  ;;  %v1680_v44 = vld [vmem:[%s2052_s6 + $0x28] sm:$0xff]  }
 0x32f   :  { %v377_v45 = vpop.f32.mrf.mxu0 }
 0x330   :  { %v378_v46 = vadd.f32 %v1374_v41, %v377_v45  ;;  %v1681_v45 = vld [vmem:[%s2052_s6 + $0x20] sm:$0xff]  }
 0x331   :  { %v1554_v47 = vpop.f32.mrf.mxu0 }
 0x332   :  { %1696 = vtanh.f32 %v378_v46 }
 0x33b   :  { %v1695_v49 = vpop.eup %1694 }
 0x33c   :  { %v383_v52 = vadd.f32 %v1695_v49, %v1868_v50 }
 0x33e   :  { %v385_v55 = vmax.f32 %v383_v52, 0.0 }
 0x33f   :  { %v1697_v53 = vpop.eup %1696 }
 0x340   :  { %v384_v54 = vadd.f32 %v1697_v53, %v1871_v51  ;;  %v1682_v53 = vld [vmem:[%s2053_s8 + $0x28] sm:$0xff]  }
 0x342   :  { %v386_v56 = vmax.f32 %v384_v54, 0.0  ;;  %v1683_v54 = vld [vmem:[%s2053_s8 + $0x20] sm:$0xff]  }
 0x344   :  { %v387_v57 = vpack.c.bf16 %v386_v56, %v385_v55  ;;  %v1412_v55 = vld [vmem:[%s2054_s7 + $0x2] ss:$0 sm:$0xff] }
 0x346   :  { %1556 = vmatpush3.bf16.msra.mxu1 %v387_v57 }
 0x347   :  { %1569 = vmatprep.subr.bf16.mxu1 %v1710_v0 }
 0x349   :  { %1558 = vmatmul.mubr.msk.bf16.vlgmr.msra.gmra.mxu1 %vm127_vm3, %v1812_v5 }
 0x34a   :  { %1573 = vmatprep.mubr.msk.bf16.mxu1 %vm1711_vm1, %v1710_v0  ;;  %1570 = vmatpush3.bf16.msra.mxu1 %v1676_v2  ;;  %v1684_v2 = vld [vmem:[%s2055_s10 + $0x28] sm:$0xff]  }
 0x34b   :  { %1571 = vmatprep.subr.bf16.mxu1 %v1710_v0 }
 0x34e   :  { %1572 = vmatpush3.bf16.msra.mxu1 %v1677_v3  ;;  %v1685_v3 = vld [vmem:[%s2055_s10 + $0x20] sm:$0xff]  }
 0x34f   :  { %1585 = vmatprep.subr.bf16.mxu1 %v1710_v0 }
 0x409   :  { %v422_v60 = vpop.f32.mrf.mxu1 }
 0x40b   :  { %v1559_v61 = vpop.f32.mrf.mxu1 }
 0x40d   :  { %v425_v62 = vpop.f32.mrf.mxu1 }
 0x40e   :  { %v429_v63 = vpack.c.bf16 %v425_v62, %v422_v60 }
 0x40f   :  { %v1560_v1 = vpop.f32.mrf.mxu1 }
 0x410   :  { %1566 = vmatmul.mubr.msk.bf16.vlgmr.msra.gmra.mxu0 %vm196_vm4, %v429_v63 }
 0x411   :  { %1581 = vmatprep.mubr.msk.bf16.mxu0 %vm1711_vm1, %v1710_v0  ;;  %1578 = vmatpush3.bf16.msra.mxu0 %v1678_v15  ;;  %v1430_v15 = vld [vmem:[%s2057_s11 + $0x2] ss:$0 sm:$0xff] }
 0x412   :  { %1579 = vmatprep.subr.bf16.mxu0 %v1710_v0 }
 0x415   :  { %1580 = vmatpush3.bf16.msra.mxu0 %v1679_v16 }
 0x416   :  { %1591 = vmatprep.subr.bf16.mxu0 %v1710_v0 }
 0x4d0   :  { %v492_v6 = vpop.f32.mrf.mxu0 }
 0x4d1   :  { %v493_v8 = vadd.f32 %v1384_v4, %v492_v6 }
 0x4d2   :  { %v1567_v7 = vpop.f32.mrf.mxu0 }
 0x4d3   :  { %v499_v12 = vmax.f32 %v493_v8, 0.0 }
 0x4d4   :  { %v495_v9 = vpop.f32.mrf.mxu0 }
 0x4d5   :  { %v496_v10 = vadd.f32 %v1384_v4, %v495_v9  ;;  %v1421_v4 = vld [vmem:[%s2056_s9 + $0x2] ss:$0 sm:$0xff] }
 0x4d6   :  { %v1568_v11 = vpop.f32.mrf.mxu0 }
 0x4d7   :  { %v500_v13 = vmax.f32 %v496_v10, 0.0 }
 0x4d9   :  { %v501_v14 = vpack.c.bf16 %v500_v13, %v499_v12 }
 0x4db   :  { %1574 = vmatmul.mubr.msk.bf16.vlgmr.msra.gmra.mxu1 %vm196_vm4, %v501_v14 }
 0x4dc   :  { %1587 = vmatprep.mubr.msk.bf16.mxu1 %vm1711_vm1, %v1710_v0 }
 0x59b   :  { %v564_v18 = vpop.f32.mrf.mxu1 }
 0x59c   :  { %v565_v20 = vadd.f32 %v1393_v17, %v564_v18 }
 0x59d   :  { %v1575_v19 = vpop.f32.mrf.mxu1 }
 0x59e   :  { %v571_v24 = vmax.f32 %v565_v20, 0.0 }
 0x59f   :  { %v567_v21 = vpop.f32.mrf.mxu1 }
 0x5a0   :  { %v568_v22 = vadd.f32 %v1393_v17, %v567_v21 }
 0x5a1   :  { %v1576_v23 = vpop.f32.mrf.mxu1 }
 0x5a2   :  { %v572_v25 = vmax.f32 %v568_v22, 0.0 }
 0x5a4   :  { %v573_v26 = vpack.c.bf16 %v572_v25, %v571_v24 }
 0x5a6   :  { %1582 = vmatmul.mubr.msk.bf16.vlgmr.msra.gmra.mxu0 %vm196_vm4, %v573_v26 }
 0x5a7   :  { %1595 = vmatprep.mubr.msk.bf16.mxu0 %vm1711_vm1, %v1710_v0  ;;  %1592 = vmatpush3.bf16.msra.mxu0 %v1680_v44 }
 0x5a8   :  { %1593 = vmatprep.subr.bf16.mxu0 %v1710_v0 }
 0x5ab   :  { %1594 = vmatpush3.bf16.msra.mxu0 %v1681_v45 }
 0x5ac   :  { %1607 = vmatprep.subr.bf16.mxu0 %v1710_v0 }
 0x666   :  { %v636_v28 = vpop.f32.mrf.mxu0 }
 0x667   :  { %v637_v29 = vadd.f32 %v1402_v27, %v636_v28 }
 0x668   :  { %v1583_v30 = vpop.f32.mrf.mxu0 }
 0x669   :  { %1698 = vtanh.f32 %v637_v29 }
 0x66a   :  { %v639_v31 = vpop.f32.mrf.mxu0 }
 0x66b   :  { %v640_v32 = vadd.f32 %v1402_v27, %v639_v31 }
 0x66c   :  { %v1584_v33 = vpop.f32.mrf.mxu0 }
 0x66d   :  { %1700 = vtanh.f32 %v640_v32  ;;  %v1686_v32 = vld [vmem:[%s2052_s6 + $0x38] sm:$0xff]   ;;  %v1687_v33 = vld [vmem:[%s2052_s6 + $0x30] sm:$0xff]  }
 0x676   :  { %v1699_v34 = vpop.eup %1698 }
 0x677   :  { %647 = vrot.lane.b32.xlu0 %v1699_v34, %s1712_s18 }
 0x67a   :  { %v1701_v35 = vpop.eup %1700 }
 0x67b   :  { %649 = vrot.lane.b32.xlu0 %v1701_v35, %s1712_s18 }
 0x6e9   :  { %v648_v36 = vpop.permute.xlu0 %647 }
 0x6ea   :  { %v653_v37 = vadd.f32 %v648_v36, %v1868_v50 }
 0x6ec   :  { %v655_v40 = vmax.f32 %v653_v37, 0.0 }
 0x6ed   :  { %v650_v38 = vpop.permute.xlu0 %649 }
 0x6ee   :  { %v654_v39 = vadd.f32 %v650_v38, %v1871_v51  ;;  %v1688_v38 = vld [vmem:[%s2053_s8 + $0x38] sm:$0xff]  }
 0x6f0   :  { %v656_v41 = vmax.f32 %v654_v39, 0.0  ;;  %v1689_v39 = vld [vmem:[%s2053_s8 + $0x30] sm:$0xff]  }
 0x6f2   :  { %v657_v42 = vpack.c.bf16 %v656_v41, %v655_v40  ;;  %v1440_v40 = vld [vmem:[%s2054_s7 + $0x3] ss:$0 sm:$0xff] }
 0x6f4   :  { %659 = vrot.lane.b32.xlu1 %v657_v42, %s1713_s0 }
 0x766   :  { %v660_v43 = vpop.permute.xlu1 %659 }
 0x767   :  { %1586 = vmatpush3.bf16.msra.mxu1 %v660_v43 }
 0x768   :  { %1599 = vmatprep.subr.bf16.mxu1 %v1710_v0 }
 0x76a   :  { %1588 = vmatmul.mubr.msk.bf16.vlgmr.msra.gmra.mxu1 %vm127_vm3, %v1812_v5 }
 0x76b   :  { %1603 = vmatprep.mubr.msk.bf16.mxu1 %vm1711_vm1, %v1710_v0  ;;  %1600 = vmatpush3.bf16.msra.mxu1 %v1682_v53  ;;  %v1691_v53 = vld [vmem:[%s2055_s10 + $0x30] sm:$0xff]  }
 0x76c   :  { %1601 = vmatprep.subr.bf16.mxu1 %v1710_v0 }
 0x76f   :  { %1602 = vmatpush3.bf16.msra.mxu1 %v1683_v54  ;;  %v1449_v54 = vld [vmem:[%s2056_s9 + $0x3] ss:$0 sm:$0xff] }
 0x770   :  { %1615 = vmatprep.subr.bf16.mxu1 %v1710_v0 }
 0x82a   :  { %v696_v46 = vpop.f32.mrf.mxu1 }
 0x82c   :  { %v1589_v47 = vpop.f32.mrf.mxu1 }
 0x82e   :  { %v699_v48 = vpop.f32.mrf.mxu1 }
 0x82f   :  { %v703_v49 = vpack.c.bf16 %v699_v48, %v696_v46 }
 0x830   :  { %v1590_v52 = vpop.f32.mrf.mxu1 }
 0x831   :  { %1596 = vmatmul.mubr.msk.bf16.vlgmr.msra.gmra.mxu0 %vm196_vm4, %v703_v49  ;;  %v1690_v52 = vld [vmem:[%s2055_s10 + $0x38] sm:$0xff]  }
 0x832   :  { %1611 = vmatprep.mubr.msk.bf16.mxu0 %vm1711_vm1, %v1710_v0  ;;  %1608 = vmatpush3.bf16.msra.mxu0 %v1684_v2 }
 0x833   :  { %1609 = vmatprep.subr.bf16.mxu0 %v1710_v0 }
 0x836   :  { %1610 = vmatpush3.bf16.msra.mxu0 %v1685_v3 }
 0x837   :  { %1621 = vmatprep.subr.bf16.mxu0 %v1710_v0 }
 0x8f1   :  { %v766_v56 = vpop.f32.mrf.mxu0 }
 0x8f2   :  { %v767_v58 = vadd.f32 %v1412_v55, %v766_v56 }
 0x8f3   :  { %v1597_v57 = vpop.f32.mrf.mxu0 }
 0x8f4   :  { %v773_v62 = vmax.f32 %v767_v58, 0.0 }
 0x8f5   :  { %v769_v59 = vpop.f32.mrf.mxu0 }
 0x8f6   :  { %v770_v60 = vadd.f32 %v1412_v55, %v769_v59 }
 0x8f7   :  { %v1598_v61 = vpop.f32.mrf.mxu0 }
 0x8f8   :  { %v774_v63 = vmax.f32 %v770_v60, 0.0 }
 0x8fa   :  { %v775_v1 = vpack.c.bf16 %v774_v63, %v773_v62 }
 0x8fc   :  { %1604 = vmatmul.mubr.msk.bf16.vlgmr.msra.gmra.mxu1 %vm196_vm4, %v775_v1  ;;  %v1458_v1 = vld [vmem:[%s2057_s11 + $0x3] ss:$0 sm:$0xff] }
 0x8fd   :  { %1617 = vmatprep.mubr.msk.bf16.mxu1 %vm1711_vm1, %v1710_v0 }
 0x9bc   :  { %v838_v6 = vpop.f32.mrf.mxu1 }
 0x9bd   :  { %v839_v8 = vadd.f32 %v1421_v4, %v838_v6 }
 0x9be   :  { %v1605_v7 = vpop.f32.mrf.mxu1 }
 0x9bf   :  { %v845_v12 = vmax.f32 %v839_v8, 0.0 }
 0x9c0   :  { %v841_v9 = vpop.f32.mrf.mxu1 }
 0x9c1   :  { %v842_v10 = vadd.f32 %v1421_v4, %v841_v9 }
 0x9c2   :  { %v1606_v11 = vpop.f32.mrf.mxu1 }
 0x9c3   :  { %v846_v13 = vmax.f32 %v842_v10, 0.0 }
 0x9c5   :  { %v847_v14 = vpack.c.bf16 %v846_v13, %v845_v12  ;;  %v1692_v12 = vld [vmem:[%s2059_s12 + $0x8] sm:$0xff]  }
 0x9c7   :  { %1612 = vmatmul.mubr.msk.bf16.vlgmr.msra.gmra.mxu0 %vm196_vm4, %v847_v14 }
 0x9c8   :  { %1625 = vmatprep.mubr.msk.bf16.mxu0 %vm1711_vm1, %v1710_v0  ;;  %1622 = vmatpush3.bf16.msra.mxu0 %v1686_v32 }
 0x9c9   :  { %1623 = vmatprep.subr.bf16.mxu0 %v1710_v0 }
 0x9cc   :  { %1624 = vmatpush3.bf16.msra.mxu0 %v1687_v33 }
 0x9cd   :  { %1637 = vmatprep.subr.bf16.mxu0 %v1710_v0 }
 0xa87   :  { %v910_v16 = vpop.f32.mrf.mxu0 }
 0xa88   :  { %v911_v17 = vadd.f32 %v1430_v15, %v910_v16 }
 0xa89   :  { %v1613_v18 = vpop.f32.mrf.mxu0 }
 0xa8a   :  { %1702 = vtanh.f32 %v911_v17 }
 0xa8b   :  { %v913_v19 = vpop.f32.mrf.mxu0 }
 0xa8c   :  { %v914_v20 = vadd.f32 %v1430_v15, %v913_v19  ;;  %v1205_v19 = vld [vmem:[%s2060_s3] sm:$0x3] }
 0xa8d   :  { %v1614_v21 = vpop.f32.mrf.mxu0 }
 0xa8e   :  { %1704 = vtanh.f32 %v914_v20 }
 0xa97   :  { %v1703_v22 = vpop.eup %1702 }
 0xa98   :  { %921 = vrot.lane.b32.xlu1 %v1703_v22, %s1714_s17 }
 0xa9b   :  { %v1705_v23 = vpop.eup %1704 }
 0xa9c   :  { %923 = vrot.lane.b32.xlu0 %v1705_v23, %s1714_s17  ;;  %v1463_v23 = vld [vmem:[%s2061_s13] ss:$0 sm:$0xff] }
 0xb0a   :  { %v922_v24 = vpop.permute.xlu1 %921 }
 0xb0b   :  { %v927_v25 = vadd.f32 %v922_v24, %v1868_v50 }
 0xb0d   :  { %v929_v28 = vmax.f32 %v927_v25, 0.0 }
 0xb0e   :  { %v924_v26 = vpop.permute.xlu0 %923 }
 0xb0f   :  { %v928_v27 = vadd.f32 %v924_v26, %v1871_v51 }
 0xb11   :  { %v930_v29 = vmax.f32 %v928_v27, 0.0 }
 0xb13   :  { %v931_v30 = vpack.c.bf16 %v930_v29, %v929_v28 }
 0xb15   :  { %933 = vrot.lane.b32.xlu1 %v931_v30, %s1714_s17 }
 0xb87   :  { %v934_v31 = vpop.permute.xlu1 %933 }
 0xb88   :  { %1616 = vmatpush3.bf16.msra.mxu1 %v934_v31 }
 0xb89   :  { %1629 = vmatprep.subr.bf16.mxu1 %v1710_v0 }
 0xb8b   :  { %1618 = vmatmul.mubr.msk.bf16.vlgmr.msra.gmra.mxu1 %vm127_vm3, %v1812_v5 }
 0xb8c   :  { %1633 = vmatprep.mubr.msk.bf16.mxu1 %vm1711_vm1, %v1710_v0  ;;  %1630 = vmatpush3.bf16.msra.mxu1 %v1688_v38 }
 0xb8d   :  { %1631 = vmatprep.subr.bf16.mxu1 %v1710_v0 }
 0xb90   :  { %1632 = vmatpush3.bf16.msra.mxu1 %v1689_v39 }
 0xb91   :  { %1645 = vmatprep.subr.mxu1 %v1710_v0 }
 0xc4b   :  { %v970_v34 = vpop.f32.mrf.mxu1 }
 0xc4d   :  { %v1619_v35 = vpop.f32.mrf.mxu1 }
 0xc4f   :  { %v973_v5 = vpop.f32.mrf.mxu1 }
 0xc50   :  { %v977_v36 = vpack.c.bf16 %v973_v5, %v970_v34 }
 0xc51   :  { %v1620_v37 = vpop.f32.mrf.mxu1 }
 0xc52   :  { %1626 = vmatmul.mubr.msk.bf16.vlgmr.msra.gmra.mxu0 %vm196_vm4, %v977_v36 }
 0xc53   :  { %1641 = vmatprep.mubr.msk.bf16.mxu0 %vm1711_vm1, %v1710_v0  ;;  %1638 = vmatpush3.bf16.msra.mxu0 %v1690_v52 }
 0xc54   :  { %1639 = vmatprep.subr.bf16.mxu0 %v1710_v0 }
 0xc57   :  { %1640 = vmatpush3.bf16.msra.mxu0 %v1691_v53 }
 0xc58   :  { %1652 = vmatprep.subr.bf16.mxu0 %v1710_v0 }
 0xd12   :  { %v1040_v41 = vpop.f32.mrf.mxu0 }
 0xd13   :  { %v1041_v43 = vadd.f32 %v1440_v40, %v1040_v41 }
 0xd14   :  { %v1627_v42 = vpop.f32.mrf.mxu0 }
 0xd15   :  { %v1047_v47 = vmax.f32 %v1041_v43, 0.0 }
 0xd16   :  { %v1043_v44 = vpop.f32.mrf.mxu0 }
 0xd17   :  { %v1044_v45 = vadd.f32 %v1440_v40, %v1043_v44 }
 0xd18   :  { %v1628_v46 = vpop.f32.mrf.mxu0 }
 0xd19   :  { %v1048_v48 = vmax.f32 %v1044_v45, 0.0 }
 0xd1b   :  { %v1049_v49 = vpack.c.bf16 %v1048_v48, %v1047_v47 }
 0xd1d   :  { %1634 = vmatmul.mubr.msk.bf16.vlgmr.msra.gmra.mxu1 %vm196_vm4, %v1049_v49 }
 0xd1e   :  { %1649 = vmatprep.mubr.msk.f32.mxu1 %vm1711_vm1, %v1710_v0 }
 0xddd   :  { %v1112_v55 = vpop.f32.mrf.mxu1 }
 0xdde   :  { %v1113_v57 = vadd.f32 %v1449_v54, %v1112_v55 }
 0xddf   :  { %v1635_v56 = vpop.f32.mrf.mxu1 }
 0xde0   :  { %v1119_v61 = vmax.f32 %v1113_v57, 0.0 }
 0xde1   :  { %v1115_v58 = vpop.f32.mrf.mxu1 }
 0xde2   :  { %v1116_v59 = vadd.f32 %v1449_v54, %v1115_v58 }
 0xde3   :  { %v1636_v60 = vpop.f32.mrf.mxu1 }
 0xde4   :  { %v1120_v62 = vmax.f32 %v1116_v59, 0.0 }
 0xde6   :  { %v1121_v63 = vpack.c.bf16 %v1120_v62, %v1119_v61 }
 0xde8   :  { %1642 = vmatmul.mubr.msk.bf16.vlgmr.msra.gmra.mxu0 %vm196_vm4, %v1121_v63 }
 0xde9   :  { %1656 = vmatprep.mubr.msk.bf16.mxu0 %vm1711_vm1, %v1710_v0  ;;  %1653 = vmatpush3.bf16.msra.mxu0 %v1692_v12 }
 0xdea   :  { %1654 = vmatprep.subr.bf16.mxu0 %v1710_v0 }
 0xea8   :  { %v1184_v2 = vpop.f32.mrf.mxu0 }
 0xea9   :  { %v1185_v3 = vadd.f32 %v1458_v1, %v1184_v2 }
 0xeaa   :  { %v1643_v4 = vpop.f32.mrf.mxu0 }
 0xeab   :  { %1706 = vtanh.f32 %v1185_v3 }
 0xeac   :  { %v1187_v6 = vpop.f32.mrf.mxu0 }
 0xead   :  { %v1188_v7 = vadd.f32 %v1458_v1, %v1187_v6 }
 0xeae   :  { %v1644_v8 = vpop.f32.mrf.mxu0 }
 0xeaf   :  { %1708 = vtanh.f32 %v1188_v7 }
 0xeb8   :  { %v1707_v9 = vpop.eup %1706 }
 0xeb9   :  { %1195 = vrot.lane.b32.xlu1 %v1707_v9, %s1713_s0 }
 0xebc   :  { %v1709_v10 = vpop.eup %1708 }
 0xebd   :  { %1197 = vrot.lane.b32.xlu0 %v1709_v10, %s1713_s0 }
 0xf2b   :  { %v1196_v11 = vpop.permute.xlu1 %1195 }
 0xf2c   :  { %v1201_v13 = vadd.f32 %v1196_v11, %v1868_v50  ;;  %v1693_v50 = vld [vmem:[%s2059_s12] sm:$0xff]  }
 0xf2d   :  { %1655 = vmatpush3.bf16.msra.mxu0 %v1693_v50 }
 0xf2e   :  { %v1203_v14 = vmax.f32 %v1201_v13, 0.0 }
 0xf2f   :  { %v1198_v15 = vpop.permute.xlu0 %1197 }
 0xf30   :  { %v1202_v16 = vadd.f32 %v1198_v15, %v1871_v51  ;;  %1208 = vrot.lane.b32.xlu1 %v1203_v14, %s1712_s18 }
 0xf32   :  { %v1204_v17 = vmax.f32 %v1202_v16, 0.0 }
 0xf34   :  { %1210 = vrot.lane.b32.xlu0 %v1204_v17, %s1712_s18 }
 0xfa2   :  { %v1209_v20 = vpop.permute.xlu1 %1208 }
 0xfa6   :  { %v1211_v18 = vpop.permute.xlu0 %1210 }
 0xfa7   :  { %1646 = vmatpush3.msra.mxu1 %v1211_v18 }
 0xfa8   :  { %1647 = vmatprep.subr.mxu1 %v1710_v0 }
 0xfa9   :  { %1648 = vmatpush3.msra.mxu1 %v1209_v20 }
 0xfaa   :  { %1650 = vmatmul.mubr.msk.f32.vlgmr.msra.gmra.mxu1 %vm127_vm3, %v1205_v19 }
0x106a   :  { %v1283_v51 = vpop.f32.mrf.mxu1 }
0x106b   :  { %v1287_v21 = vpack.c.bf16 %v1283_v51, %v1283_v51 }
0x106c   :  { %v1651_v22 = vpop.f32.mrf.mxu1 }
0x106d   :  { %1657 = vmatmul.mubr.msk.bf16.vlgmr.msra.gmra.mxu0 %vm196_vm4, %v1287_v21 }
0x112d   :  { %v1348_v24 = vpop.f32.mrf.mxu0 }
0x112e   :  { %v1349_v0 = vadd.f32 %v1463_v23, %v1348_v24 }
0x112f   :  { %v1658_v25 = vpop.f32.mrf.mxu0 }
0x1130   :  { %1355 = vst.msk [vmem:[%s2062_s14] sm:$0x3] %vm1354_vm5, %v1349_v0 }
0x1131   :  { %v1351_v26 = vpop.f32.mrf.mxu0 }
0x1133   :  { %v1659_v27 = vpop.f32.mrf.mxu0 }

</bundles_post_ra>
